<compile_context>
chip_gen: v7x
topology: tpu7x:2x2x1
jax: 0.10.0
libtpu: 0.0.40
codegen_flags: <defaults>
</compile_context>

<pallas_src>
import functools

import jax
import jax.numpy as jnp
from jax import lax
from jax.experimental import pallas as pl
from jax.experimental.pallas import tpu as pltpu


def _fused_conv_block_kernel(x_ref, w1_ref, b1_ref, w2_ref, b2_ref, mask_ref,
                             o_ref, xp2_ref, *, H, W):
    # x_ref   : (Cin, LFLAT)   zero-haloed, flattened image, LFLAT=(H+2)*(W+2)+2
    # w*_ref  : (9, Cout, Cin) 3x3 taps, BN scale folded in, compact channels
    # b*_ref  : (Cout, 1)      folded conv-bias + BN shift (f32)
    # mask_ref: (1, L)         1.0 on real columns, 0.0 on the 2 junk cols/row
    # o_ref   : (C2, L)        L = H*(W+2); junk columns stripped on the host
    # xp2_ref : (C1, LFLAT)    VMEM scratch: re-haloed stage-1 activation
    WP = W + 2
    L = H * WP
    c1 = w1_ref.shape[1]
    c2 = w2_ref.shape[1]

    def conv3x3(src_ref, w_ref, cout):
        # Shift-and-matmul: for output q = h*WP + w, tap (dy,dx) reads the flat
        # padded image at q + dy*WP + dx, so every tap is a single contiguous
        # lane-offset slice (cheap XLU rotate) feeding one small MXU matmul.
        # Columns w in {W, W+1} of each row compute junk and are masked/stripped.
        acc = jnp.zeros((cout, L), jnp.float32)
        for dy in range(3):
            for dx in range(3):
                off = dy * WP + dx
                slab = src_ref[:, off:off + L]                  # (cin, L)
                acc = acc + jnp.dot(w_ref[3 * dy + dx], slab,
                                    preferred_element_type=jnp.float32)
        return acc

    # ---- stage 1: conv + folded BN + ReLU (input already haloed by the host)
    y1 = jnp.maximum(conv3x3(x_ref, w1_ref, c1) + b1_ref[...], 0.0)
    y1 = y1 * mask_ref[...]          # zero the 2 junk columns of every flat row

    # ---- re-halo the stage-1 activation entirely on-chip:
    # shifting the flat layout by W+3 puts row r's interior at row r+1 of the
    # padded grid; the masked junk columns land exactly on the zero left/right
    # halo and the zeroed scratch supplies the top/bottom halo rows.
    xp2_ref[...] = jnp.zeros_like(xp2_ref)                      # ~12 KB, tiny
    xp2_ref[:, WP + 1:WP + 1 + L] = y1.astype(xp2_ref.dtype)

    # ---- stage 2: conv + folded BN + ReLU, activation never touches HBM
    y2 = jnp.maximum(conv3x3(xp2_ref, w2_ref, c2) + b2_ref[...], 0.0)
    o_ref[...] = y2.astype(o_ref.dtype)


def _fold_bn_into_conv(w, b, gamma, beta, mean, var, eps=1e-5):
    # BN(conv(x)+b) = conv(x; w*s) + (s*(b-mean)+beta),  s = gamma/sqrt(var+eps)
    s = gamma / jnp.sqrt(var + eps)
    return w * s, (b - mean) * s + beta


def conv_block_3_forward(x_nchw, p1, p2, *, compute_dtype=jnp.float32, eps=1e-5):
    """Fused (Conv3x3+bias -> BatchNorm(eval) -> ReLU) x 2, matching conv_block_3."""
    N, Cin, H, W = x_nchw.shape
    C1 = p1["w"].shape[-1]
    C2 = p2["w"].shape[-1]
    WP = W + 2
    L = H * WP                       # flat output length (incl. 2 junk cols/row)
    LFLAT = (H + 2) * WP + 2         # +2 so the max tap offset never reads OOB

    # Host prep: 1-pixel spatial zero-halo, flatten HxW, keep channels compact.
    xp = jnp.pad(x_nchw, ((0, 0), (0, 0), (1, 1), (1, 1)))
    xp = xp.reshape(N, Cin, (H + 2) * WP)
    xp = jnp.pad(xp, ((0, 0), (0, 0), (0, LFLAT - (H + 2) * WP)))
    xp = xp.astype(compute_dtype)

    def prep(p):
        w_f, b_f = _fold_bn_into_conv(p["w"], p["b"], p["gamma"], p["beta"],
                                      p["mean"], p["var"], eps)
        cout = w_f.shape[-1]
        cin = w_f.shape[-2]
        # (3,3,cin,cout) -> (9, cout, cin): compact, ~1-2 KB, no channel padding.
        w_k = jnp.transpose(w_f, (0, 1, 3, 2)).reshape(9, cout, cin)
        return w_k.astype(compute_dtype), b_f.reshape(cout, 1).astype(jnp.float32)

    w1, b1 = prep(p1)
    w2, b2 = prep(p2)

    # Mask of the real columns in the flattened (W+2)-wide rows.
    col = jnp.arange(L, dtype=jnp.int32) % WP
    mask = (col < W).astype(jnp.float32).reshape(1, L)

    kernel = functools.partial(_fused_conv_block_kernel, H=H, W=W)

    out = pl.pallas_call(
        kernel,
        out_shape=jax.ShapeDtypeStruct((N, C2, L), x_nchw.dtype),
        grid_spec=pltpu.PrefetchScalarGridSpec(
            num_scalar_prefetch=0,
            grid=(N,),
            in_specs=[
                pl.BlockSpec((None, Cin, LFLAT), lambda n: (n, 0, 0)),
                pl.BlockSpec((9, C1, Cin), lambda n: (0, 0, 0)),
                pl.BlockSpec((C1, 1), lambda n: (0, 0)),
                pl.BlockSpec((9, C2, C1), lambda n: (0, 0, 0)),
                pl.BlockSpec((C2, 1), lambda n: (0, 0)),
                pl.BlockSpec((1, L), lambda n: (0, 0)),
            ],
            out_specs=pl.BlockSpec((None, C2, L), lambda n: (n, 0, 0)),
            scratch_shapes=[pltpu.VMEM((C1, LFLAT), compute_dtype)],
        ),
        compiler_params=pltpu.CompilerParams(
            dimension_semantics=("parallel",)),
    )(xp, w1, b1, w2, b2, mask)

    # Strip the 2 junk columns per flat row; result is already channel-major NCHW.
    return out.reshape(N, C2, H, WP)[..., :W]


def init_stage_params(key, cin, cout):
    kw, kb, kg, kbeta, km, kv = jax.random.split(key, 6)
    fan_in = cin * 9
    bound = 1.0 / (fan_in ** 0.5)
    w = jax.random.uniform(kw, (3, 3, cin, cout), jnp.float32, -bound, bound)
    b = jax.random.uniform(kb, (cout,), jnp.float32, -bound, bound)
    gamma = jax.random.uniform(kg, (cout,), jnp.float32, 0.5, 1.5)
    beta = jax.random.uniform(kbeta, (cout,), jnp.float32, -0.5, 0.5)
    running_mean = jax.random.uniform(km, (cout,), jnp.float32, -0.5, 0.5)
    running_var = jax.random.uniform(kv, (cout,), jnp.float32, 0.5, 1.5)
    return dict(w=w, b=b, gamma=gamma, beta=beta,
                mean=running_mean, var=running_var)


def _ref_stage(x_nchw, p, eps=1e-5):
    y = lax.conv_general_dilated(
        x_nchw, p["w"], window_strides=(1, 1), padding=[(1, 1), (1, 1)],
        dimension_numbers=("NCHW", "HWIO", "NCHW"))
    y = y + p["b"][None, :, None, None]
    inv = (1.0 / jnp.sqrt(p["var"] + eps))[None, :, None, None]
    y = (y - p["mean"][None, :, None, None]) * inv * p["gamma"][None, :, None, None]
    y = y + p["beta"][None, :, None, None]
    return jnp.maximum(y, 0.0)


def _ref_forward(x_nchw, p1, p2):
    return _ref_stage(_ref_stage(x_nchw, p1), p2)


if __name__ == "__main__":
    key = jax.random.PRNGKey(0)
    kx, k1, k2 = jax.random.split(key, 3)

    N, CH_IN, CH_OUT, H, W = 2, 4, 8, 16, 16
    x = jax.random.normal(kx, (N, CH_IN, H, W), jnp.float32)   # PyTorch NCHW

    p1 = init_stage_params(k1, CH_IN, CH_OUT)
    p2 = init_stage_params(k2, CH_OUT, CH_OUT)

    out = jax.block_until_ready(conv_block_3_forward(x, p1, p2))
    ref = jax.block_until_ready(_ref_forward(x, p1, p2))

    assert out.shape == (N, CH_OUT, H, W), out.shape
    max_err = float(jnp.max(jnp.abs(out - ref)))
    assert max_err < 1e-4, f"max abs error {max_err}"

    print("KERNEL_OK")
</pallas_src>

<mosaic_0001>
module attributes {stable_mosaic.version = 11 : i64} {
  func.func @_fused_conv_block_kernel(%arg0: i32, %arg1: memref<1x4x326xf32, #tpu.memory_space<vmem>>, %arg2: memref<9x8x4xf32, #tpu.memory_space<vmem>>, %arg3: memref<8x1xf32, #tpu.memory_space<vmem>>, %arg4: memref<9x8x8xf32, #tpu.memory_space<vmem>>, %arg5: memref<8x1xf32, #tpu.memory_space<vmem>>, %arg6: memref<1x288xf32, #tpu.memory_space<vmem>>, %arg7: memref<1x8x288xf32, #tpu.memory_space<vmem>>, %arg8: memref<8x326xf32, #tpu.memory_space<vmem>>) attributes {dimension_semantics = [#tpu.dimension_semantics<parallel>], iteration_bounds = array<i64: 2>, scalar_prefetch = 0 : i64, scratch_operands = 1 : i64, tpu.core_type = #tpu.core_type<tc>, window_params = [{transform_indices = @transform_0, window_bounds = array<i64: 1, 4, 326>}, {pipeline_mode = #tpu.pipeline_mode<synchronous>, transform_indices = @transform_1, window_bounds = array<i64: 9, 8, 4>}, {pipeline_mode = #tpu.pipeline_mode<synchronous>, transform_indices = @transform_2, window_bounds = array<i64: 8, 1>}, {pipeline_mode = #tpu.pipeline_mode<synchronous>, transform_indices = @transform_3, window_bounds = array<i64: 9, 8, 8>}, {pipeline_mode = #tpu.pipeline_mode<synchronous>, transform_indices = @transform_4, window_bounds = array<i64: 8, 1>}, {pipeline_mode = #tpu.pipeline_mode<synchronous>, transform_indices = @transform_5, window_bounds = array<i64: 1, 288>}, {transform_indices = @transform_6, window_bounds = array<i64: 1, 8, 288>}]} {
    %cst = arith.constant 0.000000e+00 : f32
    %0 = vector.broadcast %cst : f32 to vector<8x288xf32>
    %c0 = arith.constant 0 : index
    %c0_0 = arith.constant 0 : index
    %c0_1 = arith.constant 0 : index
    %1 = vector.load %arg1[%c0, %c0_0, %c0_1] : memref<1x4x326xf32, #tpu.memory_space<vmem>>, vector<1x4x288xf32>
    %2 = vector.shape_cast %1 : vector<1x4x288xf32> to vector<4x288xf32>
    %c0_2 = arith.constant 0 : index
    %c0_3 = arith.constant 0 : index
    %c0_4 = arith.constant 0 : index
    %3 = vector.load %arg2[%c0_2, %c0_3, %c0_4] : memref<9x8x4xf32, #tpu.memory_space<vmem>>, vector<1x8x4xf32>
    %4 = vector.shape_cast %3 : vector<1x8x4xf32> to vector<8x4xf32>
    %cst_5 = arith.constant dense<0.000000e+00> : vector<8x288xf32>
    %5 = tpu.matmul %4, %2, %cst_5 {dimension_numbers = #tpu.dot_dimension_numbers<[1], [0], [0], [1], [0, 0, 1, 1], [], []>} : vector<8x4xf32>, vector<4x288xf32>, vector<8x288xf32> -> vector<8x288xf32>
    %6 = arith.addf %0, %5 : vector<8x288xf32>
    %c0_6 = arith.constant 0 : index
    %c0_7 = arith.constant 0 : index
    %c1 = arith.constant 1 : index
    %7 = vector.load %arg1[%c0_6, %c0_7, %c1] : memref<1x4x326xf32, #tpu.memory_space<vmem>>, vector<1x4x288xf32>
    %8 = vector.shape_cast %7 : vector<1x4x288xf32> to vector<4x288xf32>
    %c1_8 = arith.constant 1 : index
    %c0_9 = arith.constant 0 : index
    %c0_10 = arith.constant 0 : index
    %9 = vector.load %arg2[%c1_8, %c0_9, %c0_10] : memref<9x8x4xf32, #tpu.memory_space<vmem>>, vector<1x8x4xf32>
    %10 = vector.shape_cast %9 : vector<1x8x4xf32> to vector<8x4xf32>
    %cst_11 = arith.constant dense<0.000000e+00> : vector<8x288xf32>
    %11 = tpu.matmul %10, %8, %cst_11 {dimension_numbers = #tpu.dot_dimension_numbers<[1], [0], [0], [1], [0, 0, 1, 1], [], []>} : vector<8x4xf32>, vector<4x288xf32>, vector<8x288xf32> -> vector<8x288xf32>
    %12 = arith.addf %6, %11 : vector<8x288xf32>
    %c0_12 = arith.constant 0 : index
    %c0_13 = arith.constant 0 : index
    %c2 = arith.constant 2 : index
    %13 = vector.load %arg1[%c0_12, %c0_13, %c2] : memref<1x4x326xf32, #tpu.memory_space<vmem>>, vector<1x4x288xf32>
    %14 = vector.shape_cast %13 : vector<1x4x288xf32> to vector<4x288xf32>
    %c2_14 = arith.constant 2 : index
    %c0_15 = arith.constant 0 : index
    %c0_16 = arith.constant 0 : index
    %15 = vector.load %arg2[%c2_14, %c0_15, %c0_16] : memref<9x8x4xf32, #tpu.memory_space<vmem>>, vector<1x8x4xf32>
    %16 = vector.shape_cast %15 : vector<1x8x4xf32> to vector<8x4xf32>
    %cst_17 = arith.constant dense<0.000000e+00> : vector<8x288xf32>
    %17 = tpu.matmul %16, %14, %cst_17 {dimension_numbers = #tpu.dot_dimension_numbers<[1], [0], [0], [1], [0, 0, 1, 1], [], []>} : vector<8x4xf32>, vector<4x288xf32>, vector<8x288xf32> -> vector<8x288xf32>
    %18 = arith.addf %12, %17 : vector<8x288xf32>
    %c0_18 = arith.constant 0 : index
    %c0_19 = arith.constant 0 : index
    %c18 = arith.constant 18 : index
    %19 = vector.load %arg1[%c0_18, %c0_19, %c18] : memref<1x4x326xf32, #tpu.memory_space<vmem>>, vector<1x4x288xf32>
    %20 = vector.shape_cast %19 : vector<1x4x288xf32> to vector<4x288xf32>
    %c3 = arith.constant 3 : index
    %c0_20 = arith.constant 0 : index
    %c0_21 = arith.constant 0 : index
    %21 = vector.load %arg2[%c3, %c0_20, %c0_21] : memref<9x8x4xf32, #tpu.memory_space<vmem>>, vector<1x8x4xf32>
    %22 = vector.shape_cast %21 : vector<1x8x4xf32> to vector<8x4xf32>
    %cst_22 = arith.constant dense<0.000000e+00> : vector<8x288xf32>
    %23 = tpu.matmul %22, %20, %cst_22 {dimension_numbers = #tpu.dot_dimension_numbers<[1], [0], [0], [1], [0, 0, 1, 1], [], []>} : vector<8x4xf32>, vector<4x288xf32>, vector<8x288xf32> -> vector<8x288xf32>
    %24 = arith.addf %18, %23 : vector<8x288xf32>
    %c0_23 = arith.constant 0 : index
    %c0_24 = arith.constant 0 : index
    %c19 = arith.constant 19 : index
    %25 = vector.load %arg1[%c0_23, %c0_24, %c19] : memref<1x4x326xf32, #tpu.memory_space<vmem>>, vector<1x4x288xf32>
    %26 = vector.shape_cast %25 : vector<1x4x288xf32> to vector<4x288xf32>
    %c4 = arith.constant 4 : index
    %c0_25 = arith.constant 0 : index
    %c0_26 = arith.constant 0 : index
    %27 = vector.load %arg2[%c4, %c0_25, %c0_26] : memref<9x8x4xf32, #tpu.memory_space<vmem>>, vector<1x8x4xf32>
    %28 = vector.shape_cast %27 : vector<1x8x4xf32> to vector<8x4xf32>
    %cst_27 = arith.constant dense<0.000000e+00> : vector<8x288xf32>
    %29 = tpu.matmul %28, %26, %cst_27 {dimension_numbers = #tpu.dot_dimension_numbers<[1], [0], [0], [1], [0, 0, 1, 1], [], []>} : vector<8x4xf32>, vector<4x288xf32>, vector<8x288xf32> -> vector<8x288xf32>
    %30 = arith.addf %24, %29 : vector<8x288xf32>
    %c0_28 = arith.constant 0 : index
    %c0_29 = arith.constant 0 : index
    %c20 = arith.constant 20 : index
    %31 = vector.load %arg1[%c0_28, %c0_29, %c20] : memref<1x4x326xf32, #tpu.memory_space<vmem>>, vector<1x4x288xf32>
    %32 = vector.shape_cast %31 : vector<1x4x288xf32> to vector<4x288xf32>
    %c5 = arith.constant 5 : index
    %c0_30 = arith.constant 0 : index
    %c0_31 = arith.constant 0 : index
    %33 = vector.load %arg2[%c5, %c0_30, %c0_31] : memref<9x8x4xf32, #tpu.memory_space<vmem>>, vector<1x8x4xf32>
    %34 = vector.shape_cast %33 : vector<1x8x4xf32> to vector<8x4xf32>
    %cst_32 = arith.constant dense<0.000000e+00> : vector<8x288xf32>
    %35 = tpu.matmul %34, %32, %cst_32 {dimension_numbers = #tpu.dot_dimension_numbers<[1], [0], [0], [1], [0, 0, 1, 1], [], []>} : vector<8x4xf32>, vector<4x288xf32>, vector<8x288xf32> -> vector<8x288xf32>
    %36 = arith.addf %30, %35 : vector<8x288xf32>
    %c0_33 = arith.constant 0 : index
    %c0_34 = arith.constant 0 : index
    %c36 = arith.constant 36 : index
    %37 = vector.load %arg1[%c0_33, %c0_34, %c36] : memref<1x4x326xf32, #tpu.memory_space<vmem>>, vector<1x4x288xf32>
    %38 = vector.shape_cast %37 : vector<1x4x288xf32> to vector<4x288xf32>
    %c6 = arith.constant 6 : index
    %c0_35 = arith.constant 0 : index
    %c0_36 = arith.constant 0 : index
    %39 = vector.load %arg2[%c6, %c0_35, %c0_36] : memref<9x8x4xf32, #tpu.memory_space<vmem>>, vector<1x8x4xf32>
    %40 = vector.shape_cast %39 : vector<1x8x4xf32> to vector<8x4xf32>
    %cst_37 = arith.constant dense<0.000000e+00> : vector<8x288xf32>
    %41 = tpu.matmul %40, %38, %cst_37 {dimension_numbers = #tpu.dot_dimension_numbers<[1], [0], [0], [1], [0, 0, 1, 1], [], []>} : vector<8x4xf32>, vector<4x288xf32>, vector<8x288xf32> -> vector<8x288xf32>
    %42 = arith.addf %36, %41 : vector<8x288xf32>
    %c0_38 = arith.constant 0 : index
    %c0_39 = arith.constant 0 : index
    %c37 = arith.constant 37 : index
    %43 = vector.load %arg1[%c0_38, %c0_39, %c37] : memref<1x4x326xf32, #tpu.memory_space<vmem>>, vector<1x4x288xf32>
    %44 = vector.shape_cast %43 : vector<1x4x288xf32> to vector<4x288xf32>
    %c7 = arith.constant 7 : index
    %c0_40 = arith.constant 0 : index
    %c0_41 = arith.constant 0 : index
    %45 = vector.load %arg2[%c7, %c0_40, %c0_41] : memref<9x8x4xf32, #tpu.memory_space<vmem>>, vector<1x8x4xf32>
    %46 = vector.shape_cast %45 : vector<1x8x4xf32> to vector<8x4xf32>
    %cst_42 = arith.constant dense<0.000000e+00> : vector<8x288xf32>
    %47 = tpu.matmul %46, %44, %cst_42 {dimension_numbers = #tpu.dot_dimension_numbers<[1], [0], [0], [1], [0, 0, 1, 1], [], []>} : vector<8x4xf32>, vector<4x288xf32>, vector<8x288xf32> -> vector<8x288xf32>
    %48 = arith.addf %42, %47 : vector<8x288xf32>
    %c0_43 = arith.constant 0 : index
    %c0_44 = arith.constant 0 : index
    %c38 = arith.constant 38 : index
    %49 = vector.load %arg1[%c0_43, %c0_44, %c38] : memref<1x4x326xf32, #tpu.memory_space<vmem>>, vector<1x4x288xf32>
    %50 = vector.shape_cast %49 : vector<1x4x288xf32> to vector<4x288xf32>
    %c8 = arith.constant 8 : index
    %c0_45 = arith.constant 0 : index
    %c0_46 = arith.constant 0 : index
    %51 = vector.load %arg2[%c8, %c0_45, %c0_46] : memref<9x8x4xf32, #tpu.memory_space<vmem>>, vector<1x8x4xf32>
    %52 = vector.shape_cast %51 : vector<1x8x4xf32> to vector<8x4xf32>
    %cst_47 = arith.constant dense<0.000000e+00> : vector<8x288xf32>
    %53 = tpu.matmul %52, %50, %cst_47 {dimension_numbers = #tpu.dot_dimension_numbers<[1], [0], [0], [1], [0, 0, 1, 1], [], []>} : vector<8x4xf32>, vector<4x288xf32>, vector<8x288xf32> -> vector<8x288xf32>
    %54 = arith.addf %48, %53 : vector<8x288xf32>
    %c0_48 = arith.constant 0 : index
    %c0_49 = arith.constant 0 : index
    %55 = vector.load %arg3[%c0_48, %c0_49] : memref<8x1xf32, #tpu.memory_space<vmem>>, vector<8x1xf32>
    %56 = vector.broadcast %55 : vector<8x1xf32> to vector<8x288xf32>
    %57 = arith.addf %54, %56 : vector<8x288xf32>
    %cst_50 = arith.constant 0.000000e+00 : f32
    %58 = vector.broadcast %cst_50 : f32 to vector<8x288xf32>
    %59 = arith.maximumf %57, %58 : vector<8x288xf32>
    %c0_51 = arith.constant 0 : index
    %c0_52 = arith.constant 0 : index
    %60 = vector.load %arg6[%c0_51, %c0_52] : memref<1x288xf32, #tpu.memory_space<vmem>>, vector<1x288xf32>
    %61 = vector.broadcast %60 : vector<1x288xf32> to vector<8x288xf32>
    %62 = arith.mulf %59, %61 : vector<8x288xf32>
    %cst_53 = arith.constant 0.000000e+00 : f32
    %63 = vector.broadcast %cst_53 : f32 to vector<8x326xf32>
    %c0_54 = arith.constant 0 : index
    %c0_55 = arith.constant 0 : index
    %64 = vector.load %arg8[%c0_54, %c0_55] : memref<8x326xf32, #tpu.memory_space<vmem>>, vector<8x326xf32>
    tpu.vector_store %arg8[%c0_54, %c0_55], %63 {strides = array<i32>} : memref<8x326xf32, #tpu.memory_space<vmem>>, vector<8x326xf32>,
    %c0_56 = arith.constant 0 : index
    %c19_57 = arith.constant 19 : index
    %65 = vector.load %arg8[%c0_56, %c19_57] : memref<8x326xf32, #tpu.memory_space<vmem>>, vector<8x288xf32>
    tpu.vector_store %arg8[%c0_56, %c19_57], %62 {strides = array<i32>} : memref<8x326xf32, #tpu.memory_space<vmem>>, vector<8x288xf32>,
    %cst_58 = arith.constant 0.000000e+00 : f32
    %66 = vector.broadcast %cst_58 : f32 to vector<8x288xf32>
    %c0_59 = arith.constant 0 : index
    %c0_60 = arith.constant 0 : index
    %67 = vector.load %arg8[%c0_59, %c0_60] : memref<8x326xf32, #tpu.memory_space<vmem>>, vector<8x288xf32>
    %c0_61 = arith.constant 0 : index
    %c0_62 = arith.constant 0 : index
    %c0_63 = arith.constant 0 : index
    %68 = vector.load %arg4[%c0_61, %c0_62, %c0_63] : memref<9x8x8xf32, #tpu.memory_space<vmem>>, vector<1x8x8xf32>
    %69 = vector.shape_cast %68 : vector<1x8x8xf32> to vector<8x8xf32>
    %cst_64 = arith.constant dense<0.000000e+00> : vector<8x288xf32>
    %70 = tpu.matmul %69, %67, %cst_64 {dimension_numbers = #tpu.dot_dimension_numbers<[1], [0], [0], [1], [0, 0, 1, 1], [], []>} : vector<8x8xf32>, vector<8x288xf32>, vector<8x288xf32> -> vector<8x288xf32>
    %71 = arith.addf %66, %70 : vector<8x288xf32>
    %c0_65 = arith.constant 0 : index
    %c1_66 = arith.constant 1 : index
    %72 = vector.load %arg8[%c0_65, %c1_66] : memref<8x326xf32, #tpu.memory_space<vmem>>, vector<8x288xf32>
    %c1_67 = arith.constant 1 : index
    %c0_68 = arith.constant 0 : index
    %c0_69 = arith.constant 0 : index
    %73 = vector.load %arg4[%c1_67, %c0_68, %c0_69] : memref<9x8x8xf32, #tpu.memory_space<vmem>>, vector<1x8x8xf32>
    %74 = vector.shape_cast %73 : vector<1x8x8xf32> to vector<8x8xf32>
    %cst_70 = arith.constant dense<0.000000e+00> : vector<8x288xf32>
    %75 = tpu.matmul %74, %72, %cst_70 {dimension_numbers = #tpu.dot_dimension_numbers<[1], [0], [0], [1], [0, 0, 1, 1], [], []>} : vector<8x8xf32>, vector<8x288xf32>, vector<8x288xf32> -> vector<8x288xf32>
    %76 = arith.addf %71, %75 : vector<8x288xf32>
    %c0_71 = arith.constant 0 : index
    %c2_72 = arith.constant 2 : index
    %77 = vector.load %arg8[%c0_71, %c2_72] : memref<8x326xf32, #tpu.memory_space<vmem>>, vector<8x288xf32>
    %c2_73 = arith.constant 2 : index
    %c0_74 = arith.constant 0 : index
    %c0_75 = arith.constant 0 : index
    %78 = vector.load %arg4[%c2_73, %c0_74, %c0_75] : memref<9x8x8xf32, #tpu.memory_space<vmem>>, vector<1x8x8xf32>
    %79 = vector.shape_cast %78 : vector<1x8x8xf32> to vector<8x8xf32>
    %cst_76 = arith.constant dense<0.000000e+00> : vector<8x288xf32>
    %80 = tpu.matmul %79, %77, %cst_76 {dimension_numbers = #tpu.dot_dimension_numbers<[1], [0], [0], [1], [0, 0, 1, 1], [], []>} : vector<8x8xf32>, vector<8x288xf32>, vector<8x288xf32> -> vector<8x288xf32>
    %81 = arith.addf %76, %80 : vector<8x288xf32>
    %c0_77 = arith.constant 0 : index
    %c18_78 = arith.constant 18 : index
    %82 = vector.load %arg8[%c0_77, %c18_78] : memref<8x326xf32, #tpu.memory_space<vmem>>, vector<8x288xf32>
    %c3_79 = arith.constant 3 : index
    %c0_80 = arith.constant 0 : index
    %c0_81 = arith.constant 0 : index
    %83 = vector.load %arg4[%c3_79, %c0_80, %c0_81] : memref<9x8x8xf32, #tpu.memory_space<vmem>>, vector<1x8x8xf32>
    %84 = vector.shape_cast %83 : vector<1x8x8xf32> to vector<8x8xf32>
    %cst_82 = arith.constant dense<0.000000e+00> : vector<8x288xf32>
    %85 = tpu.matmul %84, %82, %cst_82 {dimension_numbers = #tpu.dot_dimension_numbers<[1], [0], [0], [1], [0, 0, 1, 1], [], []>} : vector<8x8xf32>, vector<8x288xf32>, vector<8x288xf32> -> vector<8x288xf32>
    %86 = arith.addf %81, %85 : vector<8x288xf32>
    %c0_83 = arith.constant 0 : index
    %c19_84 = arith.constant 19 : index
    %87 = vector.load %arg8[%c0_83, %c19_84] : memref<8x326xf32, #tpu.memory_space<vmem>>, vector<8x288xf32>
    %c4_85 = arith.constant 4 : index
    %c0_86 = arith.constant 0 : index
    %c0_87 = arith.constant 0 : index
    %88 = vector.load %arg4[%c4_85, %c0_86, %c0_87] : memref<9x8x8xf32, #tpu.memory_space<vmem>>, vector<1x8x8xf32>
    %89 = vector.shape_cast %88 : vector<1x8x8xf32> to vector<8x8xf32>
    %cst_88 = arith.constant dense<0.000000e+00> : vector<8x288xf32>
    %90 = tpu.matmul %89, %87, %cst_88 {dimension_numbers = #tpu.dot_dimension_numbers<[1], [0], [0], [1], [0, 0, 1, 1], [], []>} : vector<8x8xf32>, vector<8x288xf32>, vector<8x288xf32> -> vector<8x288xf32>
    %91 = arith.addf %86, %90 : vector<8x288xf32>
    %c0_89 = arith.constant 0 : index
    %c20_90 = arith.constant 20 : index
    %92 = vector.load %arg8[%c0_89, %c20_90] : memref<8x326xf32, #tpu.memory_space<vmem>>, vector<8x288xf32>
    %c5_91 = arith.constant 5 : index
    %c0_92 = arith.constant 0 : index
    %c0_93 = arith.constant 0 : index
    %93 = vector.load %arg4[%c5_91, %c0_92, %c0_93] : memref<9x8x8xf32, #tpu.memory_space<vmem>>, vector<1x8x8xf32>
    %94 = vector.shape_cast %93 : vector<1x8x8xf32> to vector<8x8xf32>
    %cst_94 = arith.constant dense<0.000000e+00> : vector<8x288xf32>
    %95 = tpu.matmul %94, %92, %cst_94 {dimension_numbers = #tpu.dot_dimension_numbers<[1], [0], [0], [1], [0, 0, 1, 1], [], []>} : vector<8x8xf32>, vector<8x288xf32>, vector<8x288xf32> -> vector<8x288xf32>
    %96 = arith.addf %91, %95 : vector<8x288xf32>
    %c0_95 = arith.constant 0 : index
    %c36_96 = arith.constant 36 : index
    %97 = vector.load %arg8[%c0_95, %c36_96] : memref<8x326xf32, #tpu.memory_space<vmem>>, vector<8x288xf32>
    %c6_97 = arith.constant 6 : index
    %c0_98 = arith.constant 0 : index
    %c0_99 = arith.constant 0 : index
    %98 = vector.load %arg4[%c6_97, %c0_98, %c0_99] : memref<9x8x8xf32, #tpu.memory_space<vmem>>, vector<1x8x8xf32>
    %99 = vector.shape_cast %98 : vector<1x8x8xf32> to vector<8x8xf32>
    %cst_100 = arith.constant dense<0.000000e+00> : vector<8x288xf32>
    %100 = tpu.matmul %99, %97, %cst_100 {dimension_numbers = #tpu.dot_dimension_numbers<[1], [0], [0], [1], [0, 0, 1, 1], [], []>} : vector<8x8xf32>, vector<8x288xf32>, vector<8x288xf32> -> vector<8x288xf32>
    %101 = arith.addf %96, %100 : vector<8x288xf32>
    %c0_101 = arith.constant 0 : index
    %c37_102 = arith.constant 37 : index
    %102 = vector.load %arg8[%c0_101, %c37_102] : memref<8x326xf32, #tpu.memory_space<vmem>>, vector<8x288xf32>
    %c7_103 = arith.constant 7 : index
    %c0_104 = arith.constant 0 : index
    %c0_105 = arith.constant 0 : index
    %103 = vector.load %arg4[%c7_103, %c0_104, %c0_105] : memref<9x8x8xf32, #tpu.memory_space<vmem>>, vector<1x8x8xf32>
    %104 = vector.shape_cast %103 : vector<1x8x8xf32> to vector<8x8xf32>
    %cst_106 = arith.constant dense<0.000000e+00> : vector<8x288xf32>
    %105 = tpu.matmul %104, %102, %cst_106 {dimension_numbers = #tpu.dot_dimension_numbers<[1], [0], [0], [1], [0, 0, 1, 1], [], []>} : vector<8x8xf32>, vector<8x288xf32>, vector<8x288xf32> -> vector<8x288xf32>
    %106 = arith.addf %101, %105 : vector<8x288xf32>
    %c0_107 = arith.constant 0 : index
    %c38_108 = arith.constant 38 : index
    %107 = vector.load %arg8[%c0_107, %c38_108] : memref<8x326xf32, #tpu.memory_space<vmem>>, vector<8x288xf32>
    %c8_109 = arith.constant 8 : index
    %c0_110 = arith.constant 0 : index
    %c0_111 = arith.constant 0 : index
    %108 = vector.load %arg4[%c8_109, %c0_110, %c0_111] : memref<9x8x8xf32, #tpu.memory_space<vmem>>, vector<1x8x8xf32>
    %109 = vector.shape_cast %108 : vector<1x8x8xf32> to vector<8x8xf32>
    %cst_112 = arith.constant dense<0.000000e+00> : vector<8x288xf32>
    %110 = tpu.matmul %109, %107, %cst_112 {dimension_numbers = #tpu.dot_dimension_numbers<[1], [0], [0], [1], [0, 0, 1, 1], [], []>} : vector<8x8xf32>, vector<8x288xf32>, vector<8x288xf32> -> vector<8x288xf32>
    %111 = arith.addf %106, %110 : vector<8x288xf32>
    %c0_113 = arith.constant 0 : index
    %c0_114 = arith.constant 0 : index
    %112 = vector.load %arg5[%c0_113, %c0_114] : memref<8x1xf32, #tpu.memory_space<vmem>>, vector<8x1xf32>
    %113 = vector.broadcast %112 : vector<8x1xf32> to vector<8x288xf32>
    %114 = arith.addf %111, %113 : vector<8x288xf32>
    %cst_115 = arith.constant 0.000000e+00 : f32
    %115 = vector.broadcast %cst_115 : f32 to vector<8x288xf32>
    %116 = arith.maximumf %114, %115 : vector<8x288xf32>
    %c0_116 = arith.constant 0 : index
    %c0_117 = arith.constant 0 : index
    %c0_118 = arith.constant 0 : index
    %117 = vector.load %arg7[%c0_116, %c0_117, %c0_118] : memref<1x8x288xf32, #tpu.memory_space<vmem>>, vector<1x8x288xf32>
    %118 = vector.shape_cast %117 : vector<1x8x288xf32> to vector<8x288xf32>
    %119 = vector.shape_cast %116 : vector<8x288xf32> to vector<1x8x288xf32>
    tpu.vector_store %arg7[%c0_116, %c0_117, %c0_118], %119 {strides = array<i32>} : memref<1x8x288xf32, #tpu.memory_space<vmem>>, vector<1x8x288xf32>,
    return
  }
  func.func @transform_0(%arg0: i32) -> (i32, i32, i32) {
    %c0_i32 = arith.constant 0 : i32
    %c0_i32_0 = arith.constant 0 : i32
    %c0_i32_1 = arith.constant 0 : i32
    return %arg0, %c0_i32, %c0_i32_0 : i32, i32, i32
  }
  func.func @transform_1(%arg0: i32) -> (i32, i32, i32) {
    %c0_i32 = arith.constant 0 : i32
    %c0_i32_0 = arith.constant 0 : i32
    %c0_i32_1 = arith.constant 0 : i32
    %c0_i32_2 = arith.constant 0 : i32
    return %c0_i32, %c0_i32_0, %c0_i32_1 : i32, i32, i32
  }
  func.func @transform_2(%arg0: i32) -> (i32, i32) {
    %c0_i32 = arith.constant 0 : i32
    %c0_i32_0 = arith.constant 0 : i32
    %c0_i32_1 = arith.constant 0 : i32
    return %c0_i32, %c0_i32_0 : i32, i32
  }
  func.func @transform_3(%arg0: i32) -> (i32, i32, i32) {
    %c0_i32 = arith.constant 0 : i32
    %c0_i32_0 = arith.constant 0 : i32
    %c0_i32_1 = arith.constant 0 : i32
    %c0_i32_2 = arith.constant 0 : i32
    return %c0_i32, %c0_i32_0, %c0_i32_1 : i32, i32, i32
  }
  func.func @transform_4(%arg0: i32) -> (i32, i32) {
    %c0_i32 = arith.constant 0 : i32
    %c0_i32_0 = arith.constant 0 : i32
    %c0_i32_1 = arith.constant 0 : i32
    return %c0_i32, %c0_i32_0 : i32, i32
  }
  func.func @transform_5(%arg0: i32) -> (i32, i32) {
    %c0_i32 = arith.constant 0 : i32
    %c0_i32_0 = arith.constant 0 : i32
    %c0_i32_1 = arith.constant 0 : i32
    return %c0_i32, %c0_i32_0 : i32, i32
  }
  func.func @transform_6(%arg0: i32) -> (i32, i32, i32) {
    %c0_i32 = arith.constant 0 : i32
    %c0_i32_0 = arith.constant 0 : i32
    %c0_i32_1 = arith.constant 0 : i32
    return %arg0, %c0_i32, %c0_i32_0 : i32, i32, i32
  }
}

</mosaic_0001>

<bundles_post_ra>
// kernel: tpu_custom_call.1
= control target key start
LH: loop header
LB: loop body
LE: loop exit
PB: predicated region body
PF: predicated region fallthrough
CT: control target
= control target key end

     0   :  { %11 = vsyncpa [#allocation4], 0  ;;  %s4149_s0 = inlined_call_operand.vmem [shape: f32[2,4,326], index: 0, kind: input, shape index: {}]   ;;  %s4150_s1 = inlined_call_operand.vmem [shape: f32[9,8,4], index: 1, kind: input, shape index: {}]   ;;  %s4151_s2 = inlined_call_operand.vmem [shape: f32[8,1], index: 2, kind: input, shape index: {}]   ;;  %s4152_s3 = inlined_call_operand.vmem [shape: f32[9,8,8], index: 3, kind: input, shape index: {}]   ;;  %s4153_s4 = inlined_call_operand.vmem [shape: f32[8,1], index: 4, kind: input, shape index: {}]   ;;  %s4154_s5 = inlined_call_operand.vmem [shape: f32[1,288], index: 5, kind: input, shape index: {}]   ;;  %s4155_s6 = inlined_call_operand.hbm [shape: f32[2,8,288], index: 6, kind: output, shape index: {}]  }
   0x1   :  { %13 = vsyncpa [#allocation4 + $0x1], 0  ;;  %s3741_s21 = smov 0   ;;  %s3743_s22 = smov 0  }
   0x2   :  { %s3745_s23 = smov 0   ;;  %s3747_s24 = smov 0  }
   0x3 LB: > { %s3762_s25 = sadd.s32 4294967295, %s3691_s24   ;;  %s3327_s26 = sadd.s32 4294967294, %s3691_s24   ;;  %s3691_s24 = sphi %s3747_s24, %s4161_s24   ;;  %s3687_s23 = sphi %s3745_s23, %s4160_s23   ;;  %s3683_s22 = sphi %s3743_s22, %s4159_s22   ;;  %s3679_s21 = sphi %s3741_s21, %s4158_s21  }
   0x4   : > { %s3766_s27 = sadd.s32 1, %s3691_s24   ;;  %s157_s28 = sadd.s32 1, %s3687_s23 }
   0x5   : > { %s154_s29 = ssub.s32 %s3691_s24, %s3766_s27  ;;  %p167_p0 = scmp.ne.s32.totalorder %s3687_s23, %s3683_s22 }
   0x6   : > { %p155_p1 = scmp.eq.s32.totalorder %s154_s29, 0  ;;  %p168_p2 = scmp.eq.s32.totalorder %s3762_s25, 1 }
   0x7   : > { %p173_p3 = scmp.ne.s32.totalorder %s3683_s22, %s3679_s21  ;;  %p174_p4 = scmp.eq.s32.totalorder %s3327_s26, 1 }
   0x8   : > { %s3777_s30 = scalar_select %p155_p1, %s3687_s23, %s157_s28  }
   0x9   : > { %p3779_p5 = por %p168_p2, %p167_p0  ;;  %p3783_p6 = por %p174_p4, %p173_p3 }
   0xa   : > { %p3330_p7 = scmp.ge.s32.totalorder %s3691_s24, 1  ;;  %p215_p8 = scmp.lt.s32.totalorder %s3691_s24, 3 }
   0xc   : > { %p216_p9 = pnand %p3330_p7, %p215_p8 }
   0xd   : > { %p245_p10 = scmp.lt.s32.totalorder (!%p216_p9), %s3762_s25, 1  ;;  %v3693_v0 = vmov (!%p216_p9), 0.0   ;;  %vm3694_vm0 = vmmov (!%p216_p9), 0   ;;  %s3695_s14 = smov (!%p216_p9), 127   ;;  %v1752_v11 = vld [vmem:[%s4151_s2] sm:$0xff] (!%p216_p9)  ;;  %v3703_v12 = vmov (!%p216_p9), 0  }
   0xe   : > { %219 = sbr.rel (%p216_p9) target bundleno = 974 (0x3ce), region = 44  ;;  %3450 = vmatprep.subr.mxu1 (!%p216_p9), %v3693_v0  ;;  %1784 = vst [vmem:[#allocation2] sm:$0xff] (!%p216_p9), %v3693_v0  ;;  %342 = vmatprep.mubr.f32.mxu0 (!%p216_p9), %v3693_v0  ;;  %s3696_s15 = smov (!%p216_p9), 126   ;;  %vm271_vm1 = vcmask (!%p216_p9), 1043456   ;;  %vm264_vm2 = vcmask (!%p216_p9), 1039360   ;;  %v3332_v18 = vld [vmem:[%s4150_s1 + $0x8] sm:$0xff] (!%p216_p9) }
   0xf   : > { %3452 = vmatprep.mubr.msk.f32.mxu1 (!%p216_p9), %vm3694_vm0, %v3693_v0  ;;  %s3697_s16 = smov (!%p216_p9), 110   ;;  %s3698_s17 = smov (!%p216_p9), 109   ;;  %3626 = vset.pattern.permute.xlu0 (!%p216_p9), %v3703_v12  ;;  %vm267_vm3 = vcmask (!%p216_p9), 31744   ;;  %vm582_vm4 = vcmask (!%p216_p9), 1031168   ;;  %v252_v24 = vld [vmem:[%s4150_s1] sm:$0xff] (!%p216_p9)  ;;  %vm751_vm5 = vcmask (!%p216_p9), 900096  }
  0x10   : > { %s3699_s18 = smov (!%p216_p9), 108   ;;  %s3700_s19 = smov (!%p216_p9), 92   ;;  %3627 = vset.pattern.permute.xlu1 (!%p216_p9), %v3703_v12  ;;  %v3343_v29 = vld [vmem:[%s4150_s1 + $0x10] sm:$0xff] (!%p216_p9)  ;;  %v3349_v32 = vld [vmem:[%s4150_s1 + $0x18] sm:$0xff] (!%p216_p9)  ;;  %vm920_vm6 = vcmask (!%p216_p9), 891904   ;;  %v3355_v34 = vld [vmem:[%s4150_s1 + $0x20] sm:$0xff] (!%p216_p9) }
  0x11   : > { %s3701_s20 = smov (!%p216_p9), 91   ;;  %s3702_s26 = smov (!%p216_p9), 90   ;;  %v3361_v39 = vld [vmem:[%s4150_s1 + $0x28] sm:$0xff] (!%p216_p9)  ;;  %vm1089_vm7 = vcmask (!%p216_p9), 883712   ;;  %v3367_v46 = vld [vmem:[%s4150_s1 + $0x30] sm:$0xff] (!%p216_p9)  ;;  %vm1258_vm8 = vcmask (!%p216_p9), 752640  }
  0x12   : > { %v3373_v49 = vld [vmem:[%s4150_s1 + $0x38] sm:$0xff] (!%p216_p9)  ;;  %v3379_v53 = vld [vmem:[%s4150_s1 + $0x40] sm:$0xff] (!%p216_p9)  ;;  %vm1427_vm9 = vcmask (!%p216_p9), 744448   ;;  %vm1596_vm10 = vcmask (!%p216_p9), 736256   ;;  %s3704_s29 = smov (!%p216_p9), 19   ;;  %vm1786_vm11 = vcmask (!%p216_p9), 572416  }
  0x13   : > { %1787 = vst.msk [vmem:[#allocation2 + $0x10] sm:$0xff] (!%p216_p9), %vm1786_vm11, %v3693_v0  ;;  %vm1803_vm12 = vcmask (!%p216_p9), 1047704   ;;  %vm1797_vm13 = vcmask (!%p216_p9), 154624   ;;  %vm1806_vm14 = vcmask (!%p216_p9), 416768   ;;  %vm1828_vm15 = vcmask (!%p216_p9), 64512  }
  0x15   : > { %s246_s9 = scalar_select %p245_p10, %s3762_s25, 1 }
  0x17   : > { %s3573_s10 = smul.u32 12, %s246_s9 }
  0x18   : > { %s3574_s9 = smul.u32 384, %s3762_s25 }
  0x19   : > { %s3797_s13 = scalar_lea.vmem %s4149_s0, %s3573_s10 }
  0x1a   : > { %v3802_v1 = vld [vmem:[%s3797_s13] sm:$0xff]  ;;  %v3810_v3 = vld [vmem:[%s3797_s13 + $0x8] sm:$0xf] }
  0x1b   : > { %258 = vrot.lane.b32.xlu1 %v3802_v1, %s3695_s14  ;;  %v257_v2 = vcombine.high %v3802_v1, %v3802_v1  ;;  %v570_v4 = vld [vmem:[%s3797_s13 + $0x8] sm:$0xf] }
  0x1c   : > { %v739_v5 = vld [vmem:[%s3797_s13 + $0x8] sm:$0xf] }
  0x1d   : > { %260 = vrot.lane.b32.xlu0 %v257_v2, %s3695_s14  ;;  %v908_v6 = vld [vmem:[%s3797_s13 + $0x8] sm:$0xf] }
  0x1e   : > { %v1077_v7 = vld [vmem:[%s3797_s13 + $0x8] sm:$0xf] }
  0x1f   : > { %578 = vrot.lane.b32.xlu1 %v257_v2, %s3696_s15  ;;  %v1246_v8 = vld [vmem:[%s3797_s13 + $0x8] sm:$0xf] }
  0x20   : > { %v1415_v9 = vld [vmem:[%s3797_s13 + $0x8] sm:$0xf] }
  0x21   : > { %262 = vrot.lane.b32.xlu0 %v3810_v3, %s3695_s14  ;;  %v1584_v10 = vld [vmem:[%s3797_s13 + $0x8] sm:$0xf]  ;;  %s4107_s13 = scalar_lea.hbm %s4155_s6, %s3574_s9 }
  0x23   : > { %576 = vrot.lane.b32.xlu1 %v3802_v1, %s3696_s15 }
  0x25   : > { %580 = vrot.lane.b32.xlu0 %v570_v4, %s3696_s15 }
  0x27   : > { %749 = vrot.lane.b32.xlu1 %v739_v5, %s3697_s16 }
  0x29   : > { %747 = vrot.lane.b32.xlu0 %v257_v2, %s3697_s16 }
  0x2b   : > { %916 = vrot.lane.b32.xlu1 %v257_v2, %s3698_s17 }
  0x2d   : > { %745 = vrot.lane.b32.xlu0 %v3802_v1, %s3697_s16 }
  0x2f   : > { %914 = vrot.lane.b32.xlu1 %v3802_v1, %s3698_s17 }
  0x31   : > { %918 = vrot.lane.b32.xlu0 %v908_v6, %s3698_s17 }
  0x33   : > { %1087 = vrot.lane.b32.xlu1 %v1077_v7, %s3699_s18 }
  0x35   : > { %1085 = vrot.lane.b32.xlu0 %v257_v2, %s3699_s18 }
  0x37   : > { %1254 = vrot.lane.b32.xlu1 %v257_v2, %s3700_s19 }
  0x39   : > { %1083 = vrot.lane.b32.xlu0 %v3802_v1, %s3699_s18 }
  0x3b   : > { %1252 = vrot.lane.b32.xlu1 %v3802_v1, %s3700_s19 }
  0x3d   : > { %1256 = vrot.lane.b32.xlu0 %v1246_v8, %s3700_s19 }
  0x3f   : > { %1425 = vrot.lane.b32.xlu1 %v1415_v9, %s3701_s20 }
  0x41   : > { %1423 = vrot.lane.b32.xlu0 %v257_v2, %s3701_s20 }
  0x43   : > { %1592 = vrot.lane.b32.xlu1 %v257_v2, %s3702_s26 }
  0x45   : > { %1421 = vrot.lane.b32.xlu0 %v3802_v1, %s3701_s20 }
  0x47   : > { %1590 = vrot.lane.b32.xlu1 %v3802_v1, %s3702_s26 }
  0x49   : > { %1594 = vrot.lane.b32.xlu0 %v1584_v10, %s3702_s26 }
  0x4d   : > { %1755 = vperm.xlu0 %3626, %v1752_v11  }
  0x8d   : > { %v259_v13 = vpop.permute.xlu1 %258 }
  0x8f   : > { %v261_v14 = vpop.permute.xlu0 %260 }
  0x90   : > { %v265_v19 = vsel %vm264_vm2, %v259_v13, %v261_v14 }
  0x91   : > { %v579_v15 = vpop.permute.xlu1 %578 }
  0x93   : > { %v263_v16 = vpop.permute.xlu0 %262 }
  0x94   : > { %3451 = vmatpush3.msk.msra.mxu1 %vm271_vm1, %v263_v16  ;;  %v266_v17 = vsel %vm264_vm2, %v261_v14, %v263_v16 }
  0x95   : > { %3333 = vmatprep.subr.msk.mxu0 %vm271_vm1, %v266_v17  ;;  %v577_v20 = vpop.permute.xlu1 %576  ;;  %3453 = vmatmul.mubr.msk.f32.vlgmr.msra.gmra.mrb[0].mxu1 %vm267_vm3, %v3332_v18 }
  0x96   : > { %3334 = vmatpush1.msk.msra.mxu0 %vm271_vm1, %v265_v19  ;;  %3455 = vmatprep.subr.mxu1 %v3693_v0  ;;  %v583_v26 = vsel %vm582_vm4, %v577_v20, %v579_v15  ;;  %v1766_v19 = vlaneseq }
  0x97   : > { %3335 = vmatmul.mubr.msk.f32.vlgmr.msra.gmra.mrb[0].mxu0 %vm267_vm3, %v3332_v18  ;;  %3338 = vmatprep.subr.msk.mxu0 %vm271_vm1, %v257_v2  ;;  %v581_v21 = vpop.permute.xlu0 %580 }
  0x98   : > { %3339 = vmatpush1.msk.msra.mxu0 %vm271_vm1, %v3802_v1  ;;  %v584_v22 = vsel %vm582_vm4, %v579_v15, %v581_v21  ;;  %492 = vmatprep.mubr.f32.mxu0 %v3693_v0 }
  0x99   : > { %3456 = vmatpush3.msk.msra.mxu1 %vm271_vm1, %v3810_v3  ;;  %3344 = vmatprep.subr.msk.mxu0 %vm271_vm1, %v584_v22  ;;  %v750_v23 = vpop.permute.xlu1 %749 }
  0x9a   : > { %3457 = vmatprep.mubr.msk.f32.mxu1 %vm3694_vm0, %v3693_v0  ;;  %3460 = vmatprep.subr.mxu1 %v3693_v0 }
  0x9b   : > { %3458 = vmatmul.mubr.msk.f32.vlgmr.msra.gmra.mrb[2].mxu1 %vm267_vm3, %v252_v24  ;;  %v748_v25 = vpop.permute.xlu0 %747 }
  0x9c   : > { %3461 = vmatpush3.msk.msra.mxu1 %vm271_vm1, %v581_v21  ;;  %3462 = vmatprep.mubr.msk.f32.mxu1 %vm3694_vm0, %v3693_v0  ;;  %v753_v28 = vsel %vm751_vm5, %v748_v25, %v750_v23 }
  0x9d   : > { %3465 = vmatprep.subr.mxu1 %v3693_v0  ;;  %v917_v27 = vpop.permute.xlu1 %916 }
  0x9f   : > { %3340 = vmatmul.mubr.msk.f32.vlgmr.msra.gmra.mrb[0].mxu0 %vm267_vm3, %v252_v24  ;;  %v746_v30 = vpop.permute.xlu0 %745  ;;  %3463 = vmatmul.mubr.msk.f32.vlgmr.msra.gmra.mrb[4].mxu1 %vm267_vm3, %v3343_v29 }
  0xa0   : > { %3345 = vmatpush1.msk.msra.mxu0 %vm271_vm1, %v583_v26  ;;  %658 = vmatprep.mubr.f32.mxu0 %v3693_v0  ;;  %v752_v35 = vsel %vm751_vm5, %v746_v30, %v748_v25 }
  0xa1   : > { %3350 = vmatprep.subr.msk.mxu0 %vm271_vm1, %v753_v28  ;;  %3466 = vmatpush3.msk.msra.mxu1 %vm271_vm1, %v750_v23  ;;  %v915_v31 = vpop.permute.xlu1 %914  ;;  %v1767_v23 = vshrl.u32 %v1766_v19, 7 }
  0xa2   : > { %3467 = vmatprep.mubr.msk.f32.mxu1 %vm3694_vm0, %v3693_v0  ;;  %3470 = vmatprep.subr.mxu1 %v3693_v0  ;;  %v921_v42 = vsel %vm920_vm6, %v915_v31, %v917_v27 }
  0xa3   : > { %v919_v33 = vpop.permute.xlu0 %918  ;;  %3468 = vmatmul.mubr.msk.f32.vlgmr.msra.gmra.mrb[6].mxu1 %vm267_vm3, %v3349_v32  ;;  %v1776_v24 = vsub.s32 2, %v1767_v23 }
  0xa4   : > { %3471 = vmatpush3.msk.msra.mxu1 %vm271_vm1, %v919_v33  ;;  %3472 = vmatprep.mubr.msk.f32.mxu1 %vm3694_vm0, %v3693_v0  ;;  %v922_v37 = vsel %vm920_vm6, %v917_v27, %v919_v33  ;;  %v1764_v27 = vld [vmem:[%s4154_s5] sm:$0x7] }
  0xa5   : > { %v1088_v36 = vpop.permute.xlu1 %1087  ;;  %3475 = vmatprep.subr.mxu1 %v3693_v0  ;;  %v1777_v31 = vrot.slane %v1764_v27, %v1776_v24 }
  0xa7   : > { %3346 = vmatmul.mubr.msk.f32.vlgmr.msra.gmra.mrb[0].mxu0 %vm267_vm3, %v3343_v29  ;;  %v1086_v38 = vpop.permute.xlu0 %1085  ;;  %3473 = vmatmul.mubr.msk.f32.vlgmr.msra.gmra.mrb[8].mxu1 %vm267_vm3, %v3355_v34 }
  0xa8   : > { %3351 = vmatpush1.msk.msra.mxu0 %vm271_vm1, %v752_v35  ;;  %827 = vmatprep.mubr.f32.mxu0 %v3693_v0  ;;  %v1091_v44 = vsel %vm1089_vm7, %v1086_v38, %v1088_v36 }
  0xa9   : > { %3356 = vmatprep.subr.msk.mxu0 %vm271_vm1, %v922_v37  ;;  %v1255_v40 = vpop.permute.xlu1 %1254  ;;  %3476 = vmatpush3.msk.msra.mxu1 %vm271_vm1, %v1088_v36 }
  0xaa   : > { %3477 = vmatprep.mubr.msk.f32.mxu1 %vm3694_vm0, %v3693_v0  ;;  %3480 = vmatprep.subr.mxu1 %v3693_v0 }
  0xab   : > { %v1084_v41 = vpop.permute.xlu0 %1083  ;;  %3478 = vmatmul.mubr.msk.f32.vlgmr.msra.gmra.mrb[10].mxu1 %vm267_vm3, %v3361_v39 }
  0xac   : > { %3482 = vmatprep.mubr.msk.f32.mxu1 %vm3694_vm0, %v3693_v0  ;;  %v1090_v50 = vsel %vm1089_vm7, %v1084_v41, %v1086_v38 }
  0xad   : > { %v1253_v43 = vpop.permute.xlu1 %1252 }
  0xae   : > { %v1259_v55 = vsel %vm1258_vm8, %v1253_v43, %v1255_v40 }
  0xaf   : > { %3352 = vmatmul.mubr.msk.f32.vlgmr.msra.gmra.mrb[0].mxu0 %vm267_vm3, %v3349_v32  ;;  %v1257_v45 = vpop.permute.xlu0 %1256 }
  0xb0   : > { %3357 = vmatpush1.msk.msra.mxu0 %vm271_vm1, %v921_v42  ;;  %996 = vmatprep.mubr.f32.mxu0 %v3693_v0  ;;  %v1260_v51 = vsel %vm1258_vm8, %v1255_v40, %v1257_v45 }
  0xb1   : > { %3362 = vmatprep.subr.msk.mxu0 %vm271_vm1, %v1091_v44  ;;  %3481 = vmatpush3.msk.msra.mxu1 %vm271_vm1, %v1257_v45  ;;  %v1426_v47 = vpop.permute.xlu1 %1425 }
  0xb2   : > { %3483 = vmatmul.mubr.msk.f32.vlgmr.msra.gmra.mrb[12].mxu1 %vm267_vm3, %v3367_v46  ;;  %3485 = vmatprep.subr.mxu1 %v3693_v0 }
  0xb3   : > { %v1424_v48 = vpop.permute.xlu0 %1423  ;;  %3486 = vmatpush3.msk.msra.mxu1 %vm271_vm1, %v1426_v47  ;;  %3487 = vmatprep.mubr.msk.f32.mxu1 %vm3694_vm0, %v3693_v0 }
  0xb4   : > { %3490 = vmatprep.subr.mxu1 %v3693_v0  ;;  %v1429_v56 = vsel %vm1427_vm9, %v1424_v48, %v1426_v47 }
  0xb5   : > { %v1593_v57 = vpop.permute.xlu1 %1592 }
  0xb6   : > { %3488 = vmatmul.mubr.msk.f32.vlgmr.msra.gmra.mrb[14].mxu1 %vm267_vm3, %v3373_v49 }
  0xb7   : > { %3358 = vmatmul.mubr.msk.f32.vlgmr.msra.gmra.mrb[0].mxu0 %vm267_vm3, %v3355_v34  ;;  %v1422_v52 = vpop.permute.xlu0 %1421  ;;  %3492 = vmatprep.mubr.msk.f32.mxu1 %vm3694_vm0, %v3693_v0  ;;  %v1768_v34 = vsub.s32 0, %v1767_v23 }
  0xb8   : > { %3363 = vmatpush1.msk.msra.mxu0 %vm271_vm1, %v1090_v50  ;;  %1165 = vmatprep.mubr.f32.mxu0 %v3693_v0  ;;  %v1428_v58 = vsel %vm1427_vm9, %v1422_v52, %v1424_v48 }
  0xb9   : > { %3368 = vmatprep.subr.msk.mxu0 %vm271_vm1, %v1260_v51  ;;  %v1591_v60 = vpop.permute.xlu1 %1590  ;;  %v1769_v37 = vrot.slane %v1764_v27, %v1768_v34 }
  0xba   : > { %v1597_v61 = vsel %vm1596_vm10, %v1591_v60, %v1593_v57 }
  0xbb   : > { %v1595_v54 = vpop.permute.xlu0 %1594 }
  0xbc   : > { %3491 = vmatpush3.msk.msra.mxu1 %vm271_vm1, %v1595_v54  ;;  %v1598_v59 = vsel %vm1596_vm10, %v1593_v57, %v1595_v54  ;;  %v3385_v57 = vld [vmem:[%s4152_s3 + $0x8] sm:$0xff] }
  0xbd   : > { %3493 = vmatmul.mubr.msk.f32.vlgmr.msra.gmra.mrb[16].mxu1 %vm267_vm3, %v3379_v53  ;;  %3495 = vmatprep.subr.mxu1 %v3693_v0 }
  0xbe   : > { %3497 = vmatprep.mubr.msk.f32.mxu1 %vm3694_vm0, %v3693_v0 }
  0xbf   : > { %3364 = vmatmul.mubr.msk.f32.vlgmr.msra.gmra.mrb[0].mxu0 %vm267_vm3, %v3361_v39  ;;  %v1772_v39 = vsub.s32 1, %v1767_v23 }
  0xc0   : > { %3369 = vmatpush1.msk.msra.mxu0 %vm271_vm1, %v1259_v55  ;;  %1334 = vmatprep.mubr.f32.mxu0 %v3693_v0 }
  0xc1   : > { %3374 = vmatprep.subr.msk.mxu0 %vm271_vm1, %v1429_v56  ;;  %v1773_v44 = vrot.slane %v1764_v27, %v1772_v39 }
  0xc7   : > { %3370 = vmatmul.mubr.msk.f32.vlgmr.msra.gmra.mrb[0].mxu0 %vm267_vm3, %v3367_v46 }
  0xc8   : > { %3375 = vmatpush1.msk.msra.mxu0 %vm271_vm1, %v1428_v58  ;;  %1503 = vmatprep.mubr.f32.mxu0 %v3693_v0 }
  0xc9   : > { %3380 = vmatprep.subr.msk.mxu0 %vm271_vm1, %v1598_v59 }
  0xcc   : > { %v1756_v26 = vpop.permute.xlu0 %1755 }
  0xcf   : > { %3376 = vmatmul.mubr.msk.f32.vlgmr.msra.gmra.mrb[0].mxu0 %vm267_vm3, %v3373_v49 }
  0xd0   : > { %3381 = vmatpush1.msk.msra.mxu0 %vm271_vm1, %v1597_v61  ;;  %1672 = vmatprep.mubr.f32.mxu0 %v3693_v0 }
  0xd7   : > { %3382 = vmatmul.mubr.msk.f32.vlgmr.msra.gmra.mrb[0].mxu0 %vm267_vm3, %v3379_v53  ;;  %v3237_v53 = vld [vmem:[%s4153_s4] sm:$0xff] }
  0xd8   : > { %1896 = vmatprep.mubr.f32.mxu0 %v3693_v0 }
 0x168   : > { %v415_v62 = vpop.f32.mrb[0].mxu1 }
 0x169   : > { %v3454_v63 = vpop.f32.mrb[1].mxu1 }
 0x16e   : > { %v565_v1 = vpop.f32.mrb[2].mxu1 }
 0x16f   : > { %v566_v2 = vadd.f32 %v565_v1, %v415_v62  ;;  %v3459_v3 = vpop.f32.mrb[3].mxu1  ;;  %v1811_v62 = vld [vmem:[%s4152_s3] sm:$0xff] }
 0x170   : > { %v3390_v3 = vld [vmem:[%s4152_s3 + $0x10] sm:$0xff] }
 0x172   : > { %v731_v4 = vpop.f32.mrb[4].mxu1 }
 0x173   : > { %v737_v5 = vadd.f32 %v731_v4, %v566_v2  ;;  %v3464_v6 = vpop.f32.mrb[5].mxu1 }
 0x176   : > { %v900_v7 = vpop.f32.mrb[6].mxu1 }
 0x177   : > { %v906_v8 = vadd.f32 %v900_v7, %v737_v5  ;;  %v3469_v9 = vpop.f32.mrb[7].mxu1 }
 0x17a   : > { %v1069_v10 = vpop.f32.mrb[8].mxu1 }
 0x17b   : > { %v1075_v11 = vadd.f32 %v1069_v10, %v906_v8  ;;  %v3474_v12 = vpop.f32.mrb[9].mxu1  ;;  %v3393_v8 = vld [vmem:[%s4152_s3 + $0x18] sm:$0xff] }
 0x17c   : > { %v3396_v12 = vld [vmem:[%s4152_s3 + $0x20] sm:$0xff] }
 0x17e   : > { %v1238_v13 = vpop.f32.mrb[10].mxu1 }
 0x17f   : > { %v1244_v14 = vadd.f32 %v1238_v13, %v1075_v11  ;;  %v3479_v15 = vpop.f32.mrb[11].mxu1 }
 0x185   : > { %v1407_v16 = vpop.f32.mrb[12].mxu1 }
 0x186   : > { %v1413_v17 = vadd.f32 %v1407_v16, %v1244_v14  ;;  %v3484_v18 = vpop.f32.mrb[13].mxu1 }
 0x189   : > { %v1576_v20 = vpop.f32.mrb[14].mxu1 }
 0x18a   : > { %v1582_v21 = vadd.f32 %v1576_v20, %v1413_v17  ;;  %v3489_v22 = vpop.f32.mrb[15].mxu1  ;;  %v3399_v17 = vld [vmem:[%s4152_s3 + $0x28] sm:$0xff]  ;;  %v3402_v20 = vld [vmem:[%s4152_s3 + $0x30] sm:$0xff] }
 0x190   : > { %v1745_v25 = vpop.f32.mrb[16].mxu1 }
 0x191   : > { %v1751_v28 = vadd.f32 %v1745_v25, %v1582_v21  ;;  %v3494_v29 = vpop.f32.mrb[17].mxu1 }
 0x192   : > { %v3405_v29 = vld [vmem:[%s4152_s3 + $0x38] sm:$0xff] }
 0x193   : > { %v1760_v30 = vadd.f32 %v1756_v26, %v1751_v28 }
 0x195   : > { %v1763_v32 = vmax.f32 %v1760_v30, 0.0 }
 0x197   : > { %v1783_v33 = vmul.f32 %v1777_v31, %v1763_v32  ;;  %v3408_v32 = vld [vmem:[%s4152_s3 + $0x40] sm:$0xff] }
 0x199   : > { %1795 = vrot.lane.b32.xlu0 %v1783_v33, %s3704_s29 }
 0x1aa   : > { %v1674_v35 = vpop.f32.mrb[0].mxu0 }
 0x1ab   : > { %v1758_v36 = vadd.f32 %v1756_v26, %v1674_v35  ;;  %v1676_v38 = vpop.f32.mrb[1].mxu0 }
 0x1ac   : > { %v1759_v40 = vadd.f32 %v1756_v26, %v1676_v38 }
 0x1ad   : > { %v1761_v41 = vmax.f32 %v1758_v36, 0.0 }
 0x1ae   : > { %v1762_v43 = vmax.f32 %v1759_v40, 0.0 }
 0x1af   : > { %v1781_v42 = vmul.f32 %v1769_v37, %v1761_v41 }
 0x1b0   : > { %v1782_v45 = vmul.f32 %v1773_v44, %v1762_v43 }
 0x1b1   : > { %1791 = vrot.lane.b32.xlu1 %v1781_v42, %s3704_s29 }
 0x1b5   : > { %1793 = vrot.lane.b32.xlu1 %v1782_v45, %s3704_s29  ;;  %s3705_s29 = smov [#allocation3]  }
 0x20b   : > { %v1796_v47 = vpop.permute.xlu0 %1795 }
 0x223   : > { %v1792_v46 = vpop.permute.xlu1 %1791 }
 0x224   : > { %1804 = vst.msk [vmem:[#allocation2] sm:$0xff] %vm1803_vm12, %v1792_v46 }
 0x227   : > { %v1794_v48 = vpop.permute.xlu1 %1793 }
 0x228   : > { %v1798_v49 = vsel %vm1797_vm13, %v1792_v46, %v1794_v48  ;;  %v1799_v50 = vsel %vm1797_vm13, %v1794_v48, %v1796_v47 }
 0x229   : > { %1807 = vst.msk [vmem:[#allocation2 + $0x10] sm:$0xff] %vm1806_vm14, %v1799_v50  ;;  %1819 = vrot.lane.b32.xlu1 %v1798_v49, %s3695_s14 }
 0x22b   : > { %v1808_v51 = vld [vmem:[#allocation2] sm:$0xff] }
 0x22d   : > { %1817 = vrot.lane.b32.xlu1 %v1808_v51, %s3695_s14 }
 0x230   : > { %v1810_v52 = vld [vmem:[#allocation2 + $0x10] sm:$0xff] }
 0x231   : > { %1821 = vrot.lane.b32.xlu0 %v1810_v52, %s3695_s14  ;;  %2123 = vrot.lane.b32.xlu1 %v1810_v52, %s3696_s15  ;;  %s3633_s14 = sshll.u32 %s3705_s29, 4  ;;  %s3634_s14 = int_to_ptr.vmem [resolvable:$false] %s3633_s14 }
 0x235   : > { %2121 = vrot.lane.b32.xlu0 %v1798_v49, %s3696_s15  ;;  %2281 = vrot.lane.b32.xlu1 %v1798_v49, %s3697_s16 }
 0x239   : > { %2119 = vrot.lane.b32.xlu0 %v1808_v51, %s3696_s15  ;;  %2279 = vrot.lane.b32.xlu1 %v1808_v51, %s3697_s16  ;;  %s3635_s15 = scalar_lea.vmem %s3634_s14, 768 }
 0x23d   : > { %2283 = vrot.lane.b32.xlu0 %v1810_v52, %s3697_s16  ;;  %2443 = vrot.lane.b32.xlu1 %v1810_v52, %s3698_s17 }
 0x241   : > { %2441 = vrot.lane.b32.xlu0 %v1798_v49, %s3698_s17  ;;  %2601 = vrot.lane.b32.xlu1 %v1798_v49, %s3699_s18 }
 0x245   : > { %2439 = vrot.lane.b32.xlu0 %v1808_v51, %s3698_s17  ;;  %2599 = vrot.lane.b32.xlu1 %v1808_v51, %s3699_s18 }
 0x249   : > { %2603 = vrot.lane.b32.xlu0 %v1810_v52, %s3699_s18  ;;  %2763 = vrot.lane.b32.xlu1 %v1810_v52, %s3700_s19 }
 0x24d   : > { %2761 = vrot.lane.b32.xlu0 %v1798_v49, %s3700_s19  ;;  %2921 = vrot.lane.b32.xlu1 %v1798_v49, %s3701_s20 }
 0x251   : > { %2759 = vrot.lane.b32.xlu0 %v1808_v51, %s3700_s19  ;;  %2919 = vrot.lane.b32.xlu1 %v1808_v51, %s3701_s20  ;;  %s242_s19 = sand.u32 1, %s3683_s22  }
 0x252   : > { %s3254_s28 = scalar_lea.sflag [#allocation4], %s242_s19 }
 0x255   : > { %2923 = vrot.lane.b32.xlu0 %v1810_v52, %s3701_s20  ;;  %3083 = vrot.lane.b32.xlu1 %v1810_v52, %s3702_s26  ;;  %s3572_s20 = smul.u32 24, %s242_s19 }
 0x259   : > { %3081 = vrot.lane.b32.xlu0 %v1798_v49, %s3702_s26  ;;  %3240 = vperm.xlu1 %3627, %v3237_v53  }
 0x25d   : > { %3079 = vrot.lane.b32.xlu0 %v1808_v51, %s3702_s26  ;;  %s244_s26 = scalar_lea.vmem [#allocation3], %s3572_s20 }
 0x25e   : > { %s3268_s10 = sshll.u32 %s244_s26, 4  ;;  %s4109_s10 = int_to_ptr.vmem [resolvable:$true] %s3268_s10 }
 0x25f   : > { %s3629_s25 = scalar_lea.vmem %s4109_s10, 384  ;;  %p3636_p0 = scmp.lt.s32.totalorder %s4109_s10, %s3634_s14 }
 0x260   : > { %p3630_p11 = scmp.ne.s32.totalorder %s4109_s10, %s3629_s25  ;;  %p3637_p1 = scmp.lt.s32.totalorder %s3635_s15, %s3629_s25 }
 0x262   : > { %p3631_p12 = pnand %p3630_p11, %p3779_p5  ;;  %p3638_p2 = por %p3637_p1, %p3636_p0 }
 0x264   : > { %p3632_p13 = pneg %p3631_p12 }
 0x266   : > { %p3639_p3 = pnand %p3638_p2, %p3632_p13 }
 0x29b   : > { %v1820_v54 = vpop.permute.xlu1 %1819 }
 0x29f   : > { %v1818_v55 = vpop.permute.xlu1 %1817 }
 0x2a0   : > { %v1823_v60 = vsel %vm264_vm2, %v1818_v55, %v1820_v54 }
 0x2a3   : > { %v1822_v56 = vpop.permute.xlu0 %1821  ;;  %v2124_v58 = vpop.permute.xlu1 %2123 }
 0x2a4   : > { %3496 = vmatpush3.msra.mxu1 %v1822_v56  ;;  %v1824_v59 = vsel %vm264_vm2, %v1820_v54, %v1822_v56 }
 0x2a5   : > { %1832 = vmatprep.subr.mxu0 %v1824_v59  ;;  %3500 = vmatprep.subr.mxu1 %v3693_v0 }
 0x2a6   : > { %3498 = vmatmul.mubr.msk.f32.vlgmr.msra.gmra.mrb[18].mxu1 %vm1828_vm15, %v3385_v57  ;;  %1833 = vmatpush1.msra.mxu0 %v1823_v60 }
 0x2a7   : > { %3501 = vmatpush3.msra.mxu1 %v1810_v52  ;;  %v2122_v61 = vpop.permute.xlu0 %2121  ;;  %3386 = vmatmul.mubr.msk.f32.vlgmr.msra.gmra.mrb[2].mxu0 %vm1828_vm15, %v3385_v57  ;;  %v2282_v63 = vpop.permute.xlu1 %2281 }
 0x2a8   : > { %1976 = vmatprep.subr.mxu0 %v1798_v49  ;;  %3502 = vmatprep.mubr.msk.f32.mxu1 %vm3694_vm0, %v3693_v0  ;;  %v2126_v1 = vsel %vm582_vm4, %v2122_v61, %v2124_v58 }
 0x2a9   : > { %3505 = vmatprep.subr.mxu1 %v3693_v0  ;;  %1977 = vmatpush1.msra.mxu0 %v1808_v51 }
 0x2aa   : > { %3503 = vmatmul.mubr.msk.f32.vlgmr.msra.gmra.mrb[20].mxu1 %vm1828_vm15, %v1811_v62  ;;  %2133 = vmatprep.subr.mxu0 %v2126_v1 }
 0x2ab   : > { %v2120_v2 = vpop.permute.xlu0 %2119  ;;  %3506 = vmatpush3.msra.mxu1 %v2124_v58  ;;  %3507 = vmatprep.mubr.msk.f32.mxu1 %vm3694_vm0, %v3693_v0  ;;  %v2280_v4 = vpop.permute.xlu1 %2279 }
 0x2ac   : > { %3510 = vmatprep.subr.mxu1 %v3693_v0  ;;  %2040 = vmatprep.mubr.f32.mxu0 %v3693_v0  ;;  %v2125_v5 = vsel %vm582_vm4, %v2120_v2, %v2122_v61  ;;  %v2285_v13 = vsel %vm751_vm5, %v2280_v4, %v2282_v63 }
 0x2ae   : > { %3508 = vmatmul.mubr.msk.f32.vlgmr.msra.gmra.mrb[22].mxu1 %vm1828_vm15, %v3390_v3 }
 0x2af   : > { %v2284_v6 = vpop.permute.xlu0 %2283  ;;  %3388 = vmatmul.mubr.msk.f32.vlgmr.msra.gmra.mrb[2].mxu0 %vm1828_vm15, %v1811_v62  ;;  %3512 = vmatprep.mubr.msk.f32.mxu1 %vm3694_vm0, %v3693_v0  ;;  %v2444_v7 = vpop.permute.xlu1 %2443 }
 0x2b0   : > { %3511 = vmatpush3.msra.mxu1 %v2284_v6  ;;  %2134 = vmatpush1.msra.mxu0 %v2125_v5  ;;  %v2286_v9 = vsel %vm751_vm5, %v2282_v63, %v2284_v6 }
 0x2b1   : > { %2293 = vmatprep.subr.mxu0 %v2286_v9  ;;  %3515 = vmatprep.subr.mxu1 %v3693_v0 }
 0x2b2   : > { %3513 = vmatmul.mubr.msk.f32.vlgmr.msra.gmra.mrb[24].mxu1 %vm1828_vm15, %v3393_v8  ;;  %2197 = vmatprep.mubr.f32.mxu0 %v3693_v0 }
 0x2b3   : > { %v2442_v10 = vpop.permute.xlu0 %2441  ;;  %3516 = vmatpush3.msra.mxu1 %v2444_v7  ;;  %3517 = vmatprep.mubr.msk.f32.mxu1 %vm3694_vm0, %v3693_v0  ;;  %v2602_v11 = vpop.permute.xlu1 %2601 }
 0x2b4   : > { %3520 = vmatprep.subr.mxu1 %v3693_v0  ;;  %v2446_v16 = vsel %vm920_vm6, %v2442_v10, %v2444_v7 }
 0x2b6   : > { %3518 = vmatmul.mubr.msk.f32.vlgmr.msra.gmra.mrb[26].mxu1 %vm1828_vm15, %v3396_v12 }
 0x2b7   : > { %v2440_v14 = vpop.permute.xlu0 %2439  ;;  %3391 = vmatmul.mubr.msk.f32.vlgmr.msra.gmra.mrb[2].mxu0 %vm1828_vm15, %v3390_v3  ;;  %v2600_v15 = vpop.permute.xlu1 %2599  ;;  %3522 = vmatprep.mubr.msk.f32.mxu1 %vm3694_vm0, %v3693_v0 }
 0x2b8   : > { %2294 = vmatpush1.msra.mxu0 %v2285_v13  ;;  %2357 = vmatprep.mubr.f32.mxu0 %v3693_v0  ;;  %v2445_v21 = vsel %vm920_vm6, %v2440_v14, %v2442_v10  ;;  %v2605_v27 = vsel %vm1089_vm7, %v2600_v15, %v2602_v11 }
 0x2b9   : > { %2453 = vmatprep.subr.mxu0 %v2446_v16 }
 0x2bb   : > { %v2604_v18 = vpop.permute.xlu0 %2603  ;;  %v2764_v19 = vpop.permute.xlu1 %2763 }
 0x2bc   : > { %3521 = vmatpush3.msra.mxu1 %v2604_v18  ;;  %v2606_v24 = vsel %vm1089_vm7, %v2602_v11, %v2604_v18 }
 0x2bd   : > { %3525 = vmatprep.subr.mxu1 %v3693_v0  ;;  %3523 = vmatmul.mubr.msk.f32.vlgmr.msra.gmra.mrb[28].mxu1 %vm1828_vm15, %v3399_v17 }
 0x2be   : > { %3526 = vmatpush3.msra.mxu1 %v2764_v19  ;;  %3527 = vmatprep.mubr.msk.f32.mxu1 %vm3694_vm0, %v3693_v0 }
 0x2bf   : > { %v2762_v22 = vpop.permute.xlu0 %2761  ;;  %3394 = vmatmul.mubr.msk.f32.vlgmr.msra.gmra.mrb[2].mxu0 %vm1828_vm15, %v3393_v8  ;;  %3530 = vmatprep.subr.mxu1 %v3693_v0  ;;  %v2922_v23 = vpop.permute.xlu1 %2921 }
 0x2c0   : > { %2454 = vmatpush1.msra.mxu0 %v2445_v21  ;;  %2517 = vmatprep.mubr.f32.mxu0 %v3693_v0  ;;  %v2766_v30 = vsel %vm1258_vm8, %v2762_v22, %v2764_v19 }
 0x2c1   : > { %2613 = vmatprep.subr.mxu0 %v2606_v24  ;;  %3528 = vmatmul.mubr.msk.f32.vlgmr.msra.gmra.mrb[30].mxu1 %vm1828_vm15, %v3402_v20 }
 0x2c2   : > { %3532 = vmatprep.mubr.msk.f32.mxu1 %vm3694_vm0, %v3693_v0 }
 0x2c3   : > { %v2760_v25 = vpop.permute.xlu0 %2759  ;;  %v2920_v26 = vpop.permute.xlu1 %2919 }
 0x2c4   : > { %v2765_v33 = vsel %vm1258_vm8, %v2760_v25, %v2762_v22  ;;  %v2925_v36 = vsel %vm1427_vm9, %v2920_v26, %v2922_v23 }
 0x2c7   : > { %v2924_v28 = vpop.permute.xlu0 %2923  ;;  %3397 = vmatmul.mubr.msk.f32.vlgmr.msra.gmra.mrb[2].mxu0 %vm1828_vm15, %v3396_v12  ;;  %v3084_v31 = vpop.permute.xlu1 %3083 }
 0x2c8   : > { %3531 = vmatpush3.msra.mxu1 %v2924_v28  ;;  %2614 = vmatpush1.msra.mxu0 %v2605_v27  ;;  %v2926_v34 = vsel %vm1427_vm9, %v2922_v23, %v2924_v28 }
 0x2c9   : > { %2773 = vmatprep.subr.mxu0 %v2766_v30  ;;  %3535 = vmatprep.subr.mxu1 %v3693_v0 }
 0x2ca   : > { %3533 = vmatmul.mubr.msk.f32.vlgmr.msra.gmra.mrb[32].mxu1 %vm1828_vm15, %v3405_v29  ;;  %2677 = vmatprep.mubr.f32.mxu0 %v3693_v0 }
 0x2cb   : > { %3536 = vmatpush3.msra.mxu1 %v3084_v31  ;;  %3537 = vmatprep.mubr.msk.f32.mxu1 %vm3694_vm0, %v3693_v0  ;;  %v3082_v35 = vpop.permute.xlu0 %3081  ;;  %vm3251_vm0 = vcmask 261120  }
 0x2cc   : > { %v3086_v37 = vsel %vm1596_vm10, %v3082_v35, %v3084_v31 }
 0x2ce   : > { %3538 = vmatmul.mubr.msk.f32.vlgmr.msra.gmra.mrb[34].mxu1 %vm1828_vm15, %v3408_v32 }
 0x2cf   : > { %3400 = vmatmul.mubr.msk.f32.vlgmr.msra.gmra.mrb[2].mxu0 %vm1828_vm15, %v3399_v17  ;;  %v3080_v38 = vpop.permute.xlu0 %3079 }
 0x2d0   : > { %2774 = vmatpush1.msra.mxu0 %v2765_v33  ;;  %2837 = vmatprep.mubr.f32.mxu0 %v3693_v0  ;;  %v3085_v39 = vsel %vm1596_vm10, %v3080_v38, %v3082_v35 }
 0x2d1   : > { %2933 = vmatprep.subr.mxu0 %v2926_v34 }
 0x2d7   : > { %3403 = vmatmul.mubr.msk.f32.vlgmr.msra.gmra.mrb[2].mxu0 %vm1828_vm15, %v3402_v20 }
 0x2d8   : > { %2934 = vmatpush1.msra.mxu0 %v2925_v36  ;;  %2997 = vmatprep.mubr.f32.mxu0 %v3693_v0  ;;  %v3241_v63 = vpop.permute.xlu1 %3240 }
 0x2d9   : > { %3093 = vmatprep.subr.mxu0 %v3086_v37 }
 0x2df   : > { %3406 = vmatmul.mubr.msk.f32.vlgmr.msra.gmra.mrb[2].mxu0 %vm1828_vm15, %v3405_v29 }
 0x2e0   : > { %3094 = vmatpush1.msra.mxu0 %v3085_v39  ;;  %3157 = vmatprep.mubr.f32.mxu0 %v3693_v0 }
 0x2e7   : > { %3409 = vmatmul.mubr.msk.f32.vlgmr.msra.gmra.mrb[2].mxu0 %vm1828_vm15, %v3408_v32 }
 0x379   : > { %v1969_v40 = vpop.f32.mrb[18].mxu1 }
 0x37a   : > { %v3499_v41 = vpop.f32.mrb[19].mxu1 }
 0x37d   : > { %v2113_v42 = vpop.f32.mrb[20].mxu1 }
 0x37e   : > { %v2114_v43 = vadd.f32 %v2113_v42, %v1969_v40  ;;  %v3504_v44 = vpop.f32.mrb[21].mxu1 }
 0x381   : > { %v2270_v45 = vpop.f32.mrb[22].mxu1 }
 0x382   : > { %v2276_v46 = vadd.f32 %v2270_v45, %v2114_v43  ;;  %v3509_v47 = vpop.f32.mrb[23].mxu1 }
 0x385   : > { %v2430_v48 = vpop.f32.mrb[24].mxu1 }
 0x386   : > { %v2436_v49 = vadd.f32 %v2430_v48, %v2276_v46  ;;  %v3514_v50 = vpop.f32.mrb[25].mxu1 }
 0x389   : > { %v2590_v51 = vpop.f32.mrb[26].mxu1 }
 0x38a   : > { %v2596_v52 = vadd.f32 %v2590_v51, %v2436_v49  ;;  %v3519_v53 = vpop.f32.mrb[27].mxu1 }
 0x390   : > { %v2750_v54 = vpop.f32.mrb[28].mxu1 }
 0x391   : > { %v2756_v55 = vadd.f32 %v2750_v54, %v2596_v52  ;;  %v3524_v0 = vpop.f32.mrb[29].mxu1 }
 0x394   : > { %v2910_v56 = vpop.f32.mrb[30].mxu1 }
 0x395   : > { %v2916_v57 = vadd.f32 %v2910_v56, %v2756_v55  ;;  %v3529_v58 = vpop.f32.mrb[31].mxu1 }
 0x39d   : > { %v3070_v59 = vpop.f32.mrb[32].mxu1 }
 0x39e   : > { %v3076_v60 = vadd.f32 %v3070_v59, %v2916_v57  ;;  %v3534_v61 = vpop.f32.mrb[33].mxu1 }
 0x3a1   : > { %v3230_v62 = vpop.f32.mrb[34].mxu1 }
 0x3a2   : > { %v3236_v1 = vadd.f32 %v3230_v62, %v3076_v60  ;;  %v3539_v2 = vpop.f32.mrb[35].mxu1 }
 0x3a4   : > { %v3245_v3 = vadd.f32 %v3241_v63, %v3236_v1 }
 0x3a6   : > { %v3248_v4 = vmax.f32 %v3245_v3, 0.0 }
 0x3a8   : > { %3252 = vst.msk [vmem:[%s244_s26 + $0x10] sm:$0xff] %vm3251_vm0, %v3248_v4 }
 0x3ba   : > { %v3159_v5 = vpop.f32.mrb[2].mxu0 }
 0x3bb   : > { %v3243_v6 = vadd.f32 %v3241_v63, %v3159_v5  ;;  %v3161_v7 = vpop.f32.mrb[3].mxu0 }
 0x3bc   : > { %v3244_v8 = vadd.f32 %v3241_v63, %v3161_v7 }
 0x3bd   : > { %v3246_v9 = vmax.f32 %v3243_v6, 0.0 }
 0x3be   : > { %v3247_v10 = vmax.f32 %v3244_v8, 0.0 }
 0x3bf   : > { %3249 = vst [vmem:[%s244_s26] sm:$0xff] %v3246_v9 }
 0x3c0   : > { %3250 = vst [vmem:[%s244_s26 + $0x8] sm:$0xff] %v3247_v10 }
 0x3c1   : > { %3642 = shalt.err (!%p3639_p3)
}
 0x3c2   : > { %s3643_s16 = scalar_lea.hbm %s4107_s13, 384  ;;  %s3647_s19 = scalar_lea.hbm %s4155_s6, 768 }
 0x3c3   : > { %p3644_p4 = scmp.ne.s32.totalorder %s4107_s13, %s3643_s16  ;;  %p3648_p9 = scmp.lt.u32.totalorder %s4107_s13, %s4155_s6 }
 0x3c4   : > { %p3649_p10 = scmp.lt.u32.totalorder %s3647_s19, %s3643_s16  ;;  %p3651_p12 = scmp.lt.u32.totalorder %s3643_s16, %s4107_s13 }
 0x3c5   : > { %p3645_p7 = pnand %p3644_p4, %p3779_p5 }
 0x3c6   : > { %p3650_p11 = por %p3649_p10, %p3648_p9 }
 0x3c7   : > { %p3646_p8 = pneg %p3645_p7 }
 0x3c8   : > { %p3652_p13 = por %p3651_p12, %p3650_p11 }
 0x3ca   : > { %p3653_p0 = pnand %p3652_p13, %p3646_p8 }
 0x3cc   : > { %3656 = shalt.err (!%p3653_p0)
}
 0x3cd   : > { %3575 = dma.vmem_to_hbm [thread:$0]  (%p3779_p5), %s4109_s10, 384, %s4107_s13, %s3254_s28  }
 0x3ce PF: > { %p3581_p1 = scmp.ge.s32.totalorder %s3691_s24, 2  ;;  %s3280_s9 = sand.u32 1, %s3679_s21  }
 0x3cf   : > { %s3281_s11 = scalar_lea.sflag [#allocation4], %s3280_s9 }
 0x3d0   : > { %p3578_p2 = pnand %p3581_p1, %p3783_p6 }
 0x3d2   : > { %3674 = dma.done.wait (!%p3578_p2), %s3281_s11, 384  }
 0x3d3   : > { %3676 = vsyncadd (!%p3578_p2), %s3281_s11, 4294966912  ;;  %p16_p3 = scmp.ge.s32.totalorder %s3766_s27, 4   ;;  %s4158_s21 = smov %s3683_s22 }
 0x3d4   : > { %s4159_s22 = smov %s3687_s23  ;;  %s4160_s23 = smov %s3777_s30 }
 0x3d5   : > { %s4161_s24 = smov %s3766_s27  ;;  %18 = sbr.rel (!%p16_p3) target bundleno = 3 (0x3), region = 95 }
 0x3dc   :  { %3286 = vsyncpa [#allocation4], 1 }
 0x3dd   :  { %3288 = vsyncpa [#allocation4 + $0x1], 1 }

</bundles_post_ra>
